<compile_context>
chip_gen: v5e
topology: v5e:2x2
jax: 0.10.0
libtpu: 0.0.40
codegen_flags: <defaults>
</compile_context>

<pallas_src>
import functools

import jax
import jax.numpy as jnp
from jax.experimental import pallas as pl
from jax.experimental.pallas import tpu as pltpu


# ----------------------------------------------------------------------------
# Fused forward kernel (single grid step, everything VMEM-resident)
# ----------------------------------------------------------------------------
def _gtn_fused_kernel(x_ref, wc_ref, bc_ref, wi_ref, bi_ref,
                      wg1_ref, wg2_ref, bg_ref, wo1_ref, wo2_ref, bo_ref,
                      out_ref, enc_ref, enc1_ref, enc2_ref, gate_ref,
                      *, d1, d2):
    f32 = jnp.float32
    x = x_ref[...]                                                    # (B, S*C)

    # Embedding towers: wc_ref / wi_ref are block-diagonal expansions of the PyTorch
    # Linear weights, so a single 2-D matmul yields the already-flattened encodings
    # (lane-dense: d1, d2 are multiples of 128) — no in-kernel transpose or reshape.
    enc1 = jnp.dot(x, wc_ref[...], preferred_element_type=f32) + bc_ref[...]   # (B, d1)
    enc2 = jnp.dot(x, wi_ref[...], preferred_element_type=f32) + bi_ref[...]   # (B, d2)

    # Gate logits + the two output-linear partial products; all MXU work issued up
    # front so the gating math latency hides under it.
    h = (jnp.dot(enc1, wg1_ref[...], preferred_element_type=f32)
         + jnp.dot(enc2, wg2_ref[...], preferred_element_type=f32)
         + bg_ref[...])                                                         # (B, 2)
    p1 = jnp.dot(enc1, wo1_ref[...], preferred_element_type=f32)                # (B, d_out)
    p2 = jnp.dot(enc2, wo2_ref[...], preferred_element_type=f32)                # (B, d_out)

    # 2-way softmax in sigmoid form (exact identity, no cross-lane reductions):
    #   softmax(h)_k = 1 / (1 + exp(h_other - h_k)) = 1 / (1 + exp((h0 + h1) - 2*h_k))
    s = h[:, 0:1] + h[:, 1:2]                                                   # (B, 1)
    gate = 1.0 / (1.0 + jnp.exp(s - 2.0 * h))                                   # (B, 2)
    g1 = gate[:, 0:1]
    g2 = gate[:, 1:2]

    enc1_ref[...] = enc1.astype(enc1_ref.dtype)          # input_to_gather (flat)
    enc2_ref[...] = enc2.astype(enc2_ref.dtype)          # channel_to_gather (flat)
    gate_ref[...] = gate.astype(gate_ref.dtype)

    # Gated encoding written straight into the lane-dense concatenated slab
    # (static 128-aligned column slices -> unmasked stores).
    enc_ref[:, 0:d1] = (enc1 * g1).astype(enc_ref.dtype)
    enc_ref[:, d1:d1 + d2] = (enc2 * g2).astype(enc_ref.dtype)

    # output_linear(cat(enc1*g1, enc2*g2)) == g1*(enc1@Wo1) + g2*(enc2@Wo2) + bo
    out_ref[...] = (g1 * p1 + g2 * p2 + bo_ref[...]).astype(out_ref.dtype)


def _full_spec(shape):
    return pl.BlockSpec(shape, lambda i: (0,) * len(shape))


def _fused_forward(x_flat, kp):
    B = x_flat.shape[0]
    d1 = kp["wg1"].shape[0]
    d2 = kp["wg2"].shape[0]
    d_output = kp["wo1"].shape[1]
    dcat = d1 + d2
    dt = x_flat.dtype

    inputs = (x_flat, kp["wc_big"], kp["bc_big"], kp["wi_big"], kp["bi_big"],
              kp["wg1"], kp["wg2"], kp["bg"], kp["wo1"], kp["wo2"], kp["bo"])

    out_shapes = (
        jax.ShapeDtypeStruct((B, d_output), dt),   # output
        jax.ShapeDtypeStruct((B, dcat), dt),       # gated encoding (concat slab)
        jax.ShapeDtypeStruct((B, d1), dt),         # encoding_1, flattened
        jax.ShapeDtypeStruct((B, d2), dt),         # encoding_2, flattened
        jax.ShapeDtypeStruct((B, 2), dt),          # gate (softmax)
    )
    return pl.pallas_call(
        functools.partial(_gtn_fused_kernel, d1=d1, d2=d2),
        out_shape=out_shapes,
        grid=(1,),
        in_specs=[_full_spec(a.shape) for a in inputs],
        out_specs=tuple(_full_spec(s.shape) for s in out_shapes),
        compiler_params=pltpu.CompilerParams(dimension_semantics=("arbitrary",)),
    )(*inputs)


# ----------------------------------------------------------------------------
# Transformer forward (same 7-tuple as the PyTorch module)
# ----------------------------------------------------------------------------
def transformer_forward(x, kp, stage="test"):
    """x: (B, d_input, d_channel)."""
    B, d_input, d_channel = x.shape
    d1 = kp["wg1"].shape[0]
    d_model = d1 // d_input

    # Free, contiguous reshape (metadata only) — the kernel consumes the flat layout.
    x_flat = x.reshape(B, d_input * d_channel)

    output, encoding, enc1_flat, enc2_flat, gate = _fused_forward(x_flat, kp)

    input_to_gather = enc1_flat.reshape(B, d_input, d_model)
    channel_to_gather = enc2_flat.reshape(B, d_channel, d_model)

    # TODO(synk): the `Encoder` class used inside forward() is not defined in the provided
    # module (and would be re-initialized with fresh random weights on every call), so the
    # two N-deep encoder stacks are treated as identity and attention scores are zeros.
    score_input = jnp.zeros((B, d_input, d_input), x.dtype)
    score_channel = jnp.zeros((B, d_channel, d_channel), x.dtype)

    # TODO(synk): `stage` ("train"/"test") only affects dropout inside the missing Encoder
    # stack, so it is accepted but unused.
    del stage

    return (output, encoding, score_input, score_channel,
            input_to_gather, channel_to_gather, gate)


# ----------------------------------------------------------------------------
# Parameters: PyTorch-shaped init + one-time re-layout into the kernel's format
# ----------------------------------------------------------------------------
def init_params(key, d_model, d_input, d_channel, d_output):
    """Deterministic init matching the PyTorch nn.Linear parameter shapes."""
    ks = jax.random.split(key, 8)
    d_cat = d_model * d_input + d_model * d_channel

    def u(k, shape, fan_in):
        bound = 1.0 / jnp.sqrt(fan_in)
        return jax.random.uniform(k, shape, jnp.float32, -bound, bound)

    return {
        "wc": u(ks[0], (d_model, d_channel), d_channel),   # embedding_channel
        "bc": u(ks[1], (d_model,), d_channel),
        "wi": u(ks[2], (d_model, d_input), d_input),       # embedding_input
        "bi": u(ks[3], (d_model,), d_input),
        "wg": u(ks[4], (2, d_cat), d_cat),                 # gate
        "bg": u(ks[5], (2,), d_cat),
        "wo": u(ks[6], (d_output, d_cat), d_cat),          # output_linear
        "bo": u(ks[7], (d_output,), d_cat),
    }


def prepare_params(p, d_input, d_channel, d_model):
    """One-time weight re-layout (outside the jitted forward).

    The two embedding Linears are expanded into block-diagonal matrices so that a single
    matmul against the flattened x produces the already-flattened encodings (the time-axis
    Linear then needs no transpose of x at all); gate/output weights are pre-transposed
    and split at the concat boundary."""
    S, C, M = d_input, d_channel, d_model
    wc_t = p["wc"].T                                       # (C, M)
    wi_t = p["wi"].T                                       # (S, M)

    # enc1_flat[b, s*M + m] = sum_c x[b, s, c] * wc_t[c, m] + bc[m]
    wc_big = jnp.kron(jnp.eye(S, dtype=wc_t.dtype), wc_t)              # (S*C, S*M)
    bc_big = jnp.tile(p["bc"], S).reshape(1, S * M)

    # enc2_flat[b, c*M + m] = sum_s x[b, s, c] * wi_t[s, m] + bi[m]
    wi_big = (jnp.eye(C, dtype=wi_t.dtype)[None, :, :, None]
              * wi_t[:, None, None, :]).reshape(S * C, C * M)
    bi_big = jnp.tile(p["bi"], C).reshape(1, C * M)

    d1 = S * M
    wg_t = p["wg"].T                                       # (d1+d2, 2)
    wo_t = p["wo"].T                                       # (d1+d2, d_output)
    return {
        "wc_big": wc_big, "bc_big": bc_big,
        "wi_big": wi_big, "bi_big": bi_big,
        "wg1": wg_t[:d1], "wg2": wg_t[d1:], "bg": p["bg"].reshape(1, -1),
        "wo1": wo_t[:d1], "wo2": wo_t[d1:], "bo": p["bo"].reshape(1, -1),
    }


# ----------------------------------------------------------------------------
# Pure-JAX reference of the same math (for a sanity cross-check)
# ----------------------------------------------------------------------------
def _reference_forward(x, p):
    B = x.shape[0]
    enc1 = jnp.einsum("bsc,mc->bsm", x, p["wc"]) + p["bc"]
    enc2 = jnp.einsum("bsc,ms->bcm", x, p["wi"]) + p["bi"]
    e1f = enc1.reshape(B, -1)
    e2f = enc2.reshape(B, -1)
    cat = jnp.concatenate([e1f, e2f], axis=-1)
    h = cat @ p["wg"].T + p["bg"]
    gate = jax.nn.softmax(h, axis=-1)
    g1, g2 = gate[:, 0:1], gate[:, 1:2]
    encoding = jnp.concatenate([e1f * g1, e2f * g2], axis=-1)
    out = encoding @ p["wo"].T + p["bo"]
    return out, encoding, enc1, enc2, gate


if __name__ == "__main__":
    B, d_input, d_channel = 2, 8, 4
    d_model, d_hidden, d_output = 32, 64, 3

    key = jax.random.PRNGKey(0)
    k_x, k_p = jax.random.split(key)
    x = jax.random.normal(k_x, (B, d_input, d_channel), jnp.float32)

    raw = init_params(k_p, d_model, d_input, d_channel, d_output)
    kp = prepare_params(raw, d_input, d_channel, d_model)   # one-time re-layout, outside jit

    fwd = jax.jit(transformer_forward, static_argnums=(2,))
    outs = jax.block_until_ready(fwd(x, kp, "test"))
    output, encoding, score_in, score_ch, in_g, ch_g, gate = outs

    assert output.shape == (B, d_output)
    assert encoding.shape == (B, d_model * d_input + d_model * d_channel)
    assert score_in.shape == (B, d_input, d_input)
    assert score_ch.shape == (B, d_channel, d_channel)
    assert in_g.shape == (B, d_input, d_model)
    assert ch_g.shape == (B, d_channel, d_model)
    assert gate.shape == (B, 2)

    # Cross-check against the plain-JAX reference (loose tolerance absorbs MXU
    # accumulation/precision differences).
    ro, re, r1, r2, rg = _reference_forward(x, raw)
    assert jnp.allclose(in_g, r1, rtol=1e-2, atol=1e-2)
    assert jnp.allclose(ch_g, r2, rtol=1e-2, atol=1e-2)
    assert jnp.allclose(gate, rg, rtol=1e-2, atol=1e-2)
    assert jnp.allclose(encoding, re, rtol=1e-2, atol=1e-2)
    assert jnp.allclose(output, ro, rtol=1e-2, atol=1e-2)

    print("KERNEL_OK")
</pallas_src>

<mosaic_0001>
module attributes {stable_mosaic.version = 11 : i64} {
  func.func @_gtn_fused_kernel(%arg0: i32, %arg1: memref<2x32xf32, #tpu.memory_space<vmem>>, %arg2: memref<32x256xf32, #tpu.memory_space<vmem>>, %arg3: memref<1x256xf32, #tpu.memory_space<vmem>>, %arg4: memref<32x128xf32, #tpu.memory_space<vmem>>, %arg5: memref<1x128xf32, #tpu.memory_space<vmem>>, %arg6: memref<256x2xf32, #tpu.memory_space<vmem>>, %arg7: memref<128x2xf32, #tpu.memory_space<vmem>>, %arg8: memref<1x2xf32, #tpu.memory_space<vmem>>, %arg9: memref<256x3xf32, #tpu.memory_space<vmem>>, %arg10: memref<128x3xf32, #tpu.memory_space<vmem>>, %arg11: memref<1x3xf32, #tpu.memory_space<vmem>>, %arg12: memref<2x3xf32, #tpu.memory_space<vmem>>, %arg13: memref<2x384xf32, #tpu.memory_space<vmem>>, %arg14: memref<2x256xf32, #tpu.memory_space<vmem>>, %arg15: memref<2x128xf32, #tpu.memory_space<vmem>>, %arg16: memref<2x2xf32, #tpu.memory_space<vmem>>) attributes {dimension_semantics = [#tpu.dimension_semantics<arbitrary>], iteration_bounds = array<i64: 1>, scalar_prefetch = 0 : i64, scratch_operands = 0 : i64, tpu.core_type = #tpu.core_type<tc>, window_params = [{pipeline_mode = #tpu.pipeline_mode<synchronous>, transform_indices = @transform_0, window_bounds = array<i64: 2, 32>}, {pipeline_mode = #tpu.pipeline_mode<synchronous>, transform_indices = @transform_1, window_bounds = array<i64: 32, 256>}, {pipeline_mode = #tpu.pipeline_mode<synchronous>, transform_indices = @transform_2, window_bounds = array<i64: 1, 256>}, {pipeline_mode = #tpu.pipeline_mode<synchronous>, transform_indices = @transform_3, window_bounds = array<i64: 32, 128>}, {pipeline_mode = #tpu.pipeline_mode<synchronous>, transform_indices = @transform_4, window_bounds = array<i64: 1, 128>}, {pipeline_mode = #tpu.pipeline_mode<synchronous>, transform_indices = @transform_5, window_bounds = array<i64: 256, 2>}, {pipeline_mode = #tpu.pipeline_mode<synchronous>, transform_indices = @transform_6, window_bounds = array<i64: 128, 2>}, {pipeline_mode = #tpu.pipeline_mode<synchronous>, transform_indices = @transform_7, window_bounds = array<i64: 1, 2>}, {pipeline_mode = #tpu.pipeline_mode<synchronous>, transform_indices = @transform_8, window_bounds = array<i64: 256, 3>}, {pipeline_mode = #tpu.pipeline_mode<synchronous>, transform_indices = @transform_9, window_bounds = array<i64: 128, 3>}, {pipeline_mode = #tpu.pipeline_mode<synchronous>, transform_indices = @transform_10, window_bounds = array<i64: 1, 3>}, {pipeline_mode = #tpu.pipeline_mode<synchronous>, transform_indices = @transform_11, window_bounds = array<i64: 2, 3>}, {pipeline_mode = #tpu.pipeline_mode<synchronous>, transform_indices = @transform_12, window_bounds = array<i64: 2, 384>}, {pipeline_mode = #tpu.pipeline_mode<synchronous>, transform_indices = @transform_13, window_bounds = array<i64: 2, 256>}, {pipeline_mode = #tpu.pipeline_mode<synchronous>, transform_indices = @transform_14, window_bounds = array<i64: 2, 128>}, {pipeline_mode = #tpu.pipeline_mode<synchronous>, transform_indices = @transform_15, window_bounds = array<i64: 2, 2>}]} {
    %c0 = arith.constant 0 : index
    %c0_0 = arith.constant 0 : index
    %0 = vector.load %arg1[%c0, %c0_0] : memref<2x32xf32, #tpu.memory_space<vmem>>, vector<2x32xf32>
    %c0_1 = arith.constant 0 : index
    %c0_2 = arith.constant 0 : index
    %1 = vector.load %arg2[%c0_1, %c0_2] : memref<32x256xf32, #tpu.memory_space<vmem>>, vector<32x256xf32>
    %cst = arith.constant dense<0.000000e+00> : vector<2x256xf32>
    %2 = tpu.matmul %0, %1, %cst {dimension_numbers = #tpu.dot_dimension_numbers<[1], [0], [0], [1], [0, 0, 1, 1], [], []>} : vector<2x32xf32>, vector<32x256xf32>, vector<2x256xf32> -> vector<2x256xf32>
    %c0_3 = arith.constant 0 : index
    %c0_4 = arith.constant 0 : index
    %3 = vector.load %arg3[%c0_3, %c0_4] : memref<1x256xf32, #tpu.memory_space<vmem>>, vector<1x256xf32>
    %4 = vector.broadcast %3 : vector<1x256xf32> to vector<2x256xf32>
    %5 = arith.addf %2, %4 : vector<2x256xf32>
    %c0_5 = arith.constant 0 : index
    %c0_6 = arith.constant 0 : index
    %6 = vector.load %arg4[%c0_5, %c0_6] : memref<32x128xf32, #tpu.memory_space<vmem>>, vector<32x128xf32>
    %cst_7 = arith.constant dense<0.000000e+00> : vector<2x128xf32>
    %7 = tpu.matmul %0, %6, %cst_7 {dimension_numbers = #tpu.dot_dimension_numbers<[1], [0], [0], [1], [0, 0, 1, 1], [], []>} : vector<2x32xf32>, vector<32x128xf32>, vector<2x128xf32> -> vector<2x128xf32>
    %c0_8 = arith.constant 0 : index
    %c0_9 = arith.constant 0 : index
    %8 = vector.load %arg5[%c0_8, %c0_9] : memref<1x128xf32, #tpu.memory_space<vmem>>, vector<1x128xf32>
    %9 = vector.broadcast %8 : vector<1x128xf32> to vector<2x128xf32>
    %10 = arith.addf %7, %9 : vector<2x128xf32>
    %c0_10 = arith.constant 0 : index
    %c0_11 = arith.constant 0 : index
    %11 = vector.load %arg6[%c0_10, %c0_11] : memref<256x2xf32, #tpu.memory_space<vmem>>, vector<256x2xf32>
    %cst_12 = arith.constant dense<0.000000e+00> : vector<2x2xf32>
    %12 = tpu.matmul %5, %11, %cst_12 {dimension_numbers = #tpu.dot_dimension_numbers<[1], [0], [0], [1], [0, 0, 1, 1], [], []>} : vector<2x256xf32>, vector<256x2xf32>, vector<2x2xf32> -> vector<2x2xf32>
    %c0_13 = arith.constant 0 : index
    %c0_14 = arith.constant 0 : index
    %13 = vector.load %arg7[%c0_13, %c0_14] : memref<128x2xf32, #tpu.memory_space<vmem>>, vector<128x2xf32>
    %cst_15 = arith.constant dense<0.000000e+00> : vector<2x2xf32>
    %14 = tpu.matmul %10, %13, %cst_15 {dimension_numbers = #tpu.dot_dimension_numbers<[1], [0], [0], [1], [0, 0, 1, 1], [], []>} : vector<2x128xf32>, vector<128x2xf32>, vector<2x2xf32> -> vector<2x2xf32>
    %15 = arith.addf %12, %14 : vector<2x2xf32>
    %c0_16 = arith.constant 0 : index
    %c0_17 = arith.constant 0 : index
    %16 = vector.load %arg8[%c0_16, %c0_17] : memref<1x2xf32, #tpu.memory_space<vmem>>, vector<1x2xf32>
    %17 = vector.broadcast %16 : vector<1x2xf32> to vector<2x2xf32>
    %18 = arith.addf %15, %17 : vector<2x2xf32>
    %c0_18 = arith.constant 0 : index
    %c0_19 = arith.constant 0 : index
    %19 = vector.load %arg9[%c0_18, %c0_19] : memref<256x3xf32, #tpu.memory_space<vmem>>, vector<256x3xf32>
    %cst_20 = arith.constant dense<0.000000e+00> : vector<2x3xf32>
    %20 = tpu.matmul %5, %19, %cst_20 {dimension_numbers = #tpu.dot_dimension_numbers<[1], [0], [0], [1], [0, 0, 1, 1], [], []>} : vector<2x256xf32>, vector<256x3xf32>, vector<2x3xf32> -> vector<2x3xf32>
    %c0_21 = arith.constant 0 : index
    %c0_22 = arith.constant 0 : index
    %21 = vector.load %arg10[%c0_21, %c0_22] : memref<128x3xf32, #tpu.memory_space<vmem>>, vector<128x3xf32>
    %cst_23 = arith.constant dense<0.000000e+00> : vector<2x3xf32>
    %22 = tpu.matmul %10, %21, %cst_23 {dimension_numbers = #tpu.dot_dimension_numbers<[1], [0], [0], [1], [0, 0, 1, 1], [], []>} : vector<2x128xf32>, vector<128x3xf32>, vector<2x3xf32> -> vector<2x3xf32>
    %23 = vector.extract_strided_slice %18 {offsets = [0, 0], sizes = [2, 1], strides = [1, 1]} : vector<2x2xf32> to vector<2x1xf32>
    %24 = vector.extract_strided_slice %18 {offsets = [0, 1], sizes = [2, 1], strides = [1, 1]} : vector<2x2xf32> to vector<2x1xf32>
    %25 = arith.addf %23, %24 : vector<2x1xf32>
    %cst_24 = arith.constant 2.000000e+00 : f32
    %26 = vector.broadcast %cst_24 : f32 to vector<2x2xf32>
    %27 = arith.mulf %26, %18 : vector<2x2xf32>
    %28 = vector.broadcast %25 : vector<2x1xf32> to vector<2x2xf32>
    %29 = arith.subf %28, %27 : vector<2x2xf32>
    %30 = math.exp %29 : vector<2x2xf32>
    %cst_25 = arith.constant 1.000000e+00 : f32
    %31 = vector.broadcast %cst_25 : f32 to vector<2x2xf32>
    %32 = arith.addf %31, %30 : vector<2x2xf32>
    %cst_26 = arith.constant 1.000000e+00 : f32
    %33 = vector.broadcast %cst_26 : f32 to vector<2x2xf32>
    %34 = arith.divf %33, %32 : vector<2x2xf32>
    %35 = vector.extract_strided_slice %34 {offsets = [0, 0], sizes = [2, 1], strides = [1, 1]} : vector<2x2xf32> to vector<2x1xf32>
    %36 = vector.extract_strided_slice %34 {offsets = [0, 1], sizes = [2, 1], strides = [1, 1]} : vector<2x2xf32> to vector<2x1xf32>
    %c0_27 = arith.constant 0 : index
    %c0_28 = arith.constant 0 : index
    %37 = vector.load %arg14[%c0_27, %c0_28] : memref<2x256xf32, #tpu.memory_space<vmem>>, vector<2x256xf32>
    tpu.vector_store %arg14[%c0_27, %c0_28], %5 {strides = array<i32>} : memref<2x256xf32, #tpu.memory_space<vmem>>, vector<2x256xf32>,
    %c0_29 = arith.constant 0 : index
    %c0_30 = arith.constant 0 : index
    %38 = vector.load %arg15[%c0_29, %c0_30] : memref<2x128xf32, #tpu.memory_space<vmem>>, vector<2x128xf32>
    tpu.vector_store %arg15[%c0_29, %c0_30], %10 {strides = array<i32>} : memref<2x128xf32, #tpu.memory_space<vmem>>, vector<2x128xf32>,
    %c0_31 = arith.constant 0 : index
    %c0_32 = arith.constant 0 : index
    %39 = vector.load %arg16[%c0_31, %c0_32] : memref<2x2xf32, #tpu.memory_space<vmem>>, vector<2x2xf32>
    tpu.vector_store %arg16[%c0_31, %c0_32], %34 {strides = array<i32>} : memref<2x2xf32, #tpu.memory_space<vmem>>, vector<2x2xf32>,
    %40 = vector.broadcast %35 : vector<2x1xf32> to vector<2x256xf32>
    %41 = arith.mulf %5, %40 : vector<2x256xf32>
    %c0_33 = arith.constant 0 : index
    %c0_34 = arith.constant 0 : index
    %42 = vector.load %arg13[%c0_33, %c0_34] : memref<2x384xf32, #tpu.memory_space<vmem>>, vector<2x256xf32>
    tpu.vector_store %arg13[%c0_33, %c0_34], %41 {strides = array<i32>} : memref<2x384xf32, #tpu.memory_space<vmem>>, vector<2x256xf32>,
    %43 = vector.broadcast %36 : vector<2x1xf32> to vector<2x128xf32>
    %44 = arith.mulf %10, %43 : vector<2x128xf32>
    %c0_35 = arith.constant 0 : index
    %c256 = arith.constant 256 : index
    %45 = vector.load %arg13[%c0_35, %c256] : memref<2x384xf32, #tpu.memory_space<vmem>>, vector<2x128xf32>
    tpu.vector_store %arg13[%c0_35, %c256], %44 {strides = array<i32>} : memref<2x384xf32, #tpu.memory_space<vmem>>, vector<2x128xf32>,
    %46 = vector.broadcast %35 : vector<2x1xf32> to vector<2x3xf32>
    %47 = arith.mulf %46, %20 : vector<2x3xf32>
    %48 = vector.broadcast %36 : vector<2x1xf32> to vector<2x3xf32>
    %49 = arith.mulf %48, %22 : vector<2x3xf32>
    %50 = arith.addf %47, %49 : vector<2x3xf32>
    %c0_36 = arith.constant 0 : index
    %c0_37 = arith.constant 0 : index
    %51 = vector.load %arg11[%c0_36, %c0_37] : memref<1x3xf32, #tpu.memory_space<vmem>>, vector<1x3xf32>
    %52 = vector.broadcast %51 : vector<1x3xf32> to vector<2x3xf32>
    %53 = arith.addf %50, %52 : vector<2x3xf32>
    %c0_38 = arith.constant 0 : index
    %c0_39 = arith.constant 0 : index
    %54 = vector.load %arg12[%c0_38, %c0_39] : memref<2x3xf32, #tpu.memory_space<vmem>>, vector<2x3xf32>
    tpu.vector_store %arg12[%c0_38, %c0_39], %53 {strides = array<i32>} : memref<2x3xf32, #tpu.memory_space<vmem>>, vector<2x3xf32>,
    return
  }
  func.func @transform_0(%arg0: i32) -> (i32, i32) {
    %c0_i32 = arith.constant 0 : i32
    %c0_i32_0 = arith.constant 0 : i32
    %c0_i32_1 = arith.constant 0 : i32
    return %c0_i32, %c0_i32_0 : i32, i32
  }
  func.func @transform_1(%arg0: i32) -> (i32, i32) {
    %c0_i32 = arith.constant 0 : i32
    %c0_i32_0 = arith.constant 0 : i32
    %c0_i32_1 = arith.constant 0 : i32
    return %c0_i32, %c0_i32_0 : i32, i32
  }
  func.func @transform_2(%arg0: i32) -> (i32, i32) {
    %c0_i32 = arith.constant 0 : i32
    %c0_i32_0 = arith.constant 0 : i32
    %c0_i32_1 = arith.constant 0 : i32
    return %c0_i32, %c0_i32_0 : i32, i32
  }
  func.func @transform_3(%arg0: i32) -> (i32, i32) {
    %c0_i32 = arith.constant 0 : i32
    %c0_i32_0 = arith.constant 0 : i32
    %c0_i32_1 = arith.constant 0 : i32
    return %c0_i32, %c0_i32_0 : i32, i32
  }
  func.func @transform_4(%arg0: i32) -> (i32, i32) {
    %c0_i32 = arith.constant 0 : i32
    %c0_i32_0 = arith.constant 0 : i32
    %c0_i32_1 = arith.constant 0 : i32
    return %c0_i32, %c0_i32_0 : i32, i32
  }
  func.func @transform_5(%arg0: i32) -> (i32, i32) {
    %c0_i32 = arith.constant 0 : i32
    %c0_i32_0 = arith.constant 0 : i32
    %c0_i32_1 = arith.constant 0 : i32
    return %c0_i32, %c0_i32_0 : i32, i32
  }
  func.func @transform_6(%arg0: i32) -> (i32, i32) {
    %c0_i32 = arith.constant 0 : i32
    %c0_i32_0 = arith.constant 0 : i32
    %c0_i32_1 = arith.constant 0 : i32
    return %c0_i32, %c0_i32_0 : i32, i32
  }
  func.func @transform_7(%arg0: i32) -> (i32, i32) {
    %c0_i32 = arith.constant 0 : i32
    %c0_i32_0 = arith.constant 0 : i32
    %c0_i32_1 = arith.constant 0 : i32
    return %c0_i32, %c0_i32_0 : i32, i32
  }
  func.func @transform_8(%arg0: i32) -> (i32, i32) {
    %c0_i32 = arith.constant 0 : i32
    %c0_i32_0 = arith.constant 0 : i32
    %c0_i32_1 = arith.constant 0 : i32
    return %c0_i32, %c0_i32_0 : i32, i32
  }
  func.func @transform_9(%arg0: i32) -> (i32, i32) {
    %c0_i32 = arith.constant 0 : i32
    %c0_i32_0 = arith.constant 0 : i32
    %c0_i32_1 = arith.constant 0 : i32
    return %c0_i32, %c0_i32_0 : i32, i32
  }
  func.func @transform_10(%arg0: i32) -> (i32, i32) {
    %c0_i32 = arith.constant 0 : i32
    %c0_i32_0 = arith.constant 0 : i32
    %c0_i32_1 = arith.constant 0 : i32
    return %c0_i32, %c0_i32_0 : i32, i32
  }
  func.func @transform_11(%arg0: i32) -> (i32, i32) {
    %c0_i32 = arith.constant 0 : i32
    %c0_i32_0 = arith.constant 0 : i32
    %c0_i32_1 = arith.constant 0 : i32
    return %c0_i32, %c0_i32_0 : i32, i32
  }
  func.func @transform_12(%arg0: i32) -> (i32, i32) {
    %c0_i32 = arith.constant 0 : i32
    %c0_i32_0 = arith.constant 0 : i32
    %c0_i32_1 = arith.constant 0 : i32
    return %c0_i32, %c0_i32_0 : i32, i32
  }
  func.func @transform_13(%arg0: i32) -> (i32, i32) {
    %c0_i32 = arith.constant 0 : i32
    %c0_i32_0 = arith.constant 0 : i32
    %c0_i32_1 = arith.constant 0 : i32
    return %c0_i32, %c0_i32_0 : i32, i32
  }
  func.func @transform_14(%arg0: i32) -> (i32, i32) {
    %c0_i32 = arith.constant 0 : i32
    %c0_i32_0 = arith.constant 0 : i32
    %c0_i32_1 = arith.constant 0 : i32
    return %c0_i32, %c0_i32_0 : i32, i32
  }
  func.func @transform_15(%arg0: i32) -> (i32, i32) {
    %c0_i32 = arith.constant 0 : i32
    %c0_i32_0 = arith.constant 0 : i32
    %c0_i32_1 = arith.constant 0 : i32
    return %c0_i32, %c0_i32_0 : i32, i32
  }
}

</mosaic_0001>

<bundles_post_ra>
// kernel: transformer_forward.1
= control target key start
LH: loop header
LB: loop body
LE: loop exit
PB: predicated region body
PF: predicated region fallthrough
CT: control target
= control target key end

     0   :  { %21 = vsyncpa [#allocation3], 0  ;;  %vm60_vm0 = vcmask 261120   ;;  %s1030_s0 = inlined_call_operand.vmem [shape: f32[2,32], index: 0, kind: input, shape index: {}]   ;;  %s1031_s1 = inlined_call_operand.vmem [shape: f32[32,256], index: 1, kind: input, shape index: {}]   ;;  %s1032_s2 = inlined_call_operand.vmem [shape: f32[1,256], index: 2, kind: input, shape index: {}]   ;;  %s1033_s3 = inlined_call_operand.vmem [shape: f32[32,128], index: 3, kind: input, shape index: {}]   ;;  %s1034_s4 = inlined_call_operand.vmem [shape: f32[1,128], index: 4, kind: input, shape index: {}]   ;;  %s1035_s5 = inlined_call_operand.vmem [shape: f32[256,2], index: 5, kind: input, shape index: {}]   ;;  %s1036_s6 = inlined_call_operand.vmem [shape: f32[128,2], index: 6, kind: input, shape index: {}]   ;;  %s1037_s7 = inlined_call_operand.vmem [shape: f32[1,2], index: 7, kind: input, shape index: {}]   ;;  %s1038_s8 = inlined_call_operand.vmem [shape: f32[256,3], index: 8, kind: input, shape index: {}]   ;;  %s1039_s9 = inlined_call_operand.vmem [shape: f32[128,3], index: 9, kind: input, shape index: {}]   ;;  %s1040_s10 = inlined_call_operand.vmem [shape: f32[1,3], index: 10, kind: input, shape index: {}]   ;;  %s1041_s11 = inlined_call_operand.hbm [shape: f32[2,3], index: 11, kind: output, shape index: {0}]   ;;  %s1042_s12 = inlined_call_operand.hbm [shape: f32[2,384], index: 12, kind: output, shape index: {1}]   ;;  %s1043_s13 = inlined_call_operand.vmem [shape: f32[2,256], index: 13, kind: output, shape index: {2}]   ;;  %s1044_s14 = inlined_call_operand.vmem [shape: f32[2,128], index: 14, kind: output, shape index: {3}]   ;;  %s1045_s15 = inlined_call_operand.hbm [shape: f32[2,2], index: 15, kind: output, shape index: {4}]  }
   0x1   :  { %v52_v0 = vld [vmem:[%s1031_s1 + $0x30] sm:$0xff]  ;;  %v107_v1 = vld [vmem:[%s1033_s3 + $0x18] sm:$0xff]  ;;  %v50_v2 = vld [vmem:[%s1031_s1 + $0x20] sm:$0xff] }
   0x2   :  { %76 = vmatpush.msra.mxu1 %v52_v0  ;;  %124 = vmatpush.msra.mxu2 %v107_v1  ;;  %v106_v3 = vld [vmem:[%s1033_s3 + $0x10] sm:$0xff]  ;;  %v105_v5 = vld [vmem:[%s1033_s3 + $0x8] sm:$0xff]  ;;  %v46_v6 = vld [vmem:[%s1031_s1] sm:$0xff] }
   0x3   :  { %v48_v4 = vld [vmem:[%s1031_s1 + $0x10] sm:$0xff]  ;;  %v104_v7 = vld [vmem:[%s1033_s3] sm:$0xff]  ;;  %v147_v8 = vld [vmem:[%s1035_s5 + $0x78] sm:$0xff] }
   0x4   :  { %77 = vmatpush.msra.mxu1 %v50_v2  ;;  %125 = vmatpush.msra.mxu2 %v106_v3  ;;  %v45_v9 = vld [vmem:[%s1030_s0] sm:$0x3]  ;;  %v179_v10 = vld [vmem:[%s1036_s6 + $0x78] sm:$0xff]  ;;  %v146_v12 = vld [vmem:[%s1035_s5 + $0x70] sm:$0xff] }
   0x5   :  { %v53_v11 = vld [vmem:[%s1031_s1 + $0x38] sm:$0xff]  ;;  %200 = vmatpush.msra.mxu0 %v147_v8  ;;  %180 = vmatpush.msra.mxu3 %v179_v10  ;;  %v178_v13 = vld [vmem:[%s1036_s6 + $0x70] sm:$0xff]  ;;  %v51_v14 = vld [vmem:[%s1031_s1 + $0x28] sm:$0xff] }
   0x6   :  { %78 = vmatpush.msra.mxu1 %v48_v4  ;;  %126 = vmatpush.msra.mxu2 %v105_v5  ;;  %v145_v15 = vld [vmem:[%s1035_s5 + $0x68] sm:$0xff]  ;;  %v49_v17 = vld [vmem:[%s1031_s1 + $0x18] sm:$0xff]  ;;  %v144_v18 = vld [vmem:[%s1035_s5 + $0x60] sm:$0xff] }
   0x7   :  { %201 = vmatpush.msra.mxu0 %v146_v12  ;;  %v177_v16 = vld [vmem:[%s1036_s6 + $0x68] sm:$0xff]  ;;  %181 = vmatpush.msra.mxu3 %v178_v13  ;;  %v176_v19 = vld [vmem:[%s1036_s6 + $0x60] sm:$0xff]  ;;  %v143_v21 = vld [vmem:[%s1035_s5 + $0x58] sm:$0xff] }
   0x8   :  { %79 = vmatpush.msra.mxu1 %v46_v6  ;;  %127 = vmatpush.msra.mxu2 %v104_v7  ;;  %v47_v20 = vld [vmem:[%s1031_s1 + $0x8] sm:$0xff]  ;;  %v175_v22 = vld [vmem:[%s1036_s6 + $0x58] sm:$0xff]  ;;  %v142_v24 = vld [vmem:[%s1035_s5 + $0x50] sm:$0xff] }
   0x9   :  { %477 = vmatmul.msk.f32.vlgmr.msra.gmra.mxu1 %vm60_vm0, %v45_v9  ;;  %479 = vmatmul.msk.f32.vlgmr.msra.gmra.mxu2 %vm60_vm0, %v45_v9  ;;  %v260_v23 = vld [vmem:[%s1038_s8 + $0x78] sm:$0xff]  ;;  %v259_v25 = vld [vmem:[%s1038_s8 + $0x70] sm:$0xff]  ;;  %v141_v27 = vld [vmem:[%s1035_s5 + $0x48] sm:$0xff] }
   0xa   :  { %96 = vmatpush.msrb.mxu1 %v53_v11  ;;  %202 = vmatpush.msra.mxu0 %v145_v15  ;;  %v174_v26 = vld [vmem:[%s1036_s6 + $0x50] sm:$0xff]  ;;  %v258_v28 = vld [vmem:[%s1038_s8 + $0x68] sm:$0xff]  ;;  %v163_v30 = vld [vmem:[%s1035_s5 + $0xf8] sm:$0xff] }
   0xb   :  { %182 = vmatpush.msra.mxu3 %v177_v16  ;;  %277 = vmatpush.msrb.mxu2 %v260_v23  ;;  %v173_v29 = vld [vmem:[%s1036_s6 + $0x48] sm:$0xff]  ;;  %v140_v31 = vld [vmem:[%s1035_s5 + $0x40] sm:$0xff]  ;;  %v162_v33 = vld [vmem:[%s1035_s5 + $0xf0] sm:$0xff] }
   0xc   :  { %97 = vmatpush.msrb.mxu1 %v51_v14  ;;  %203 = vmatpush.msra.mxu0 %v144_v18  ;;  %v257_v32 = vld [vmem:[%s1038_s8 + $0x60] sm:$0xff]  ;;  %v139_v35 = vld [vmem:[%s1035_s5 + $0x38] sm:$0xff]  ;;  %v161_v37 = vld [vmem:[%s1035_s5 + $0xe8] sm:$0xff] }
   0xd   :  { %183 = vmatpush.msra.mxu3 %v176_v19  ;;  %278 = vmatpush.msrb.mxu2 %v259_v25  ;;  %v172_v34 = vld [vmem:[%s1036_s6 + $0x40] sm:$0xff]  ;;  %v256_v36 = vld [vmem:[%s1038_s8 + $0x58] sm:$0xff]  ;;  %v138_v40 = vld [vmem:[%s1035_s5 + $0x30] sm:$0xff] }
   0xe   :  { %98 = vmatpush.msrb.mxu1 %v49_v17  ;;  %204 = vmatpush.msra.mxu0 %v143_v21  ;;  %v171_v38 = vld [vmem:[%s1036_s6 + $0x38] sm:$0xff]  ;;  %v160_v39 = vld [vmem:[%s1035_s5 + $0xe0] sm:$0xff]  ;;  %v255_v41 = vld [vmem:[%s1038_s8 + $0x50] sm:$0xff] }
   0xf   :  { %184 = vmatpush.msra.mxu3 %v175_v22  ;;  %279 = vmatpush.msrb.mxu2 %v258_v28  ;;  %v170_v42 = vld [vmem:[%s1036_s6 + $0x30] sm:$0xff]  ;;  %v159_v43 = vld [vmem:[%s1035_s5 + $0xd8] sm:$0xff]  ;;  %v137_v44 = vld [vmem:[%s1035_s5 + $0x28] sm:$0xff] }
  0x10   :  { %99 = vmatpush.msrb.mxu1 %v47_v20  ;;  %205 = vmatpush.msra.mxu0 %v142_v24  ;;  %v254_v45 = vld [vmem:[%s1038_s8 + $0x48] sm:$0xff]  ;;  %v136_v46 = vld [vmem:[%s1035_s5 + $0x20] sm:$0xff]  ;;  %v158_v48 = vld [vmem:[%s1035_s5 + $0xd0] sm:$0xff] }
  0x11   :  { %478 = vmatmul.msk.f32.vlgmr.msrb.gmra.mxu1 %vm60_vm0, %v45_v9  ;;  %185 = vmatpush.msra.mxu3 %v174_v26  ;;  %v169_v47 = vld [vmem:[%s1036_s6 + $0x28] sm:$0xff]  ;;  %v135_v49 = vld [vmem:[%s1035_s5 + $0x18] sm:$0xff]  ;;  %v168_v50 = vld [vmem:[%s1036_s6 + $0x20] sm:$0xff] }
  0x12   :  { %220 = vmatpush.msra.mxu1 %v163_v30  ;;  %206 = vmatpush.msra.mxu0 %v141_v27  ;;  %v253_v51 = vld [vmem:[%s1038_s8 + $0x40] sm:$0xff]  ;;  %v157_v52 = vld [vmem:[%s1035_s5 + $0xc8] sm:$0xff]  ;;  %v252_v53 = vld [vmem:[%s1038_s8 + $0x38] sm:$0xff] }
  0x13   :  { %186 = vmatpush.msra.mxu3 %v173_v29  ;;  %280 = vmatpush.msrb.mxu2 %v257_v32 }
  0x14   :  { %221 = vmatpush.msra.mxu1 %v162_v33  ;;  %207 = vmatpush.msra.mxu0 %v140_v31 }
  0x15   :  { %187 = vmatpush.msra.mxu3 %v172_v34  ;;  %281 = vmatpush.msrb.mxu2 %v256_v36 }
  0x16   :  { %222 = vmatpush.msra.mxu1 %v161_v37  ;;  %208 = vmatpush.msra.mxu0 %v139_v35 }
  0x17   :  { %188 = vmatpush.msra.mxu3 %v171_v38  ;;  %282 = vmatpush.msrb.mxu2 %v255_v41 }
  0x18   :  { %223 = vmatpush.msra.mxu1 %v160_v39  ;;  %209 = vmatpush.msra.mxu0 %v138_v40 }
  0x19   :  { %189 = vmatpush.msra.mxu3 %v170_v42  ;;  %283 = vmatpush.msrb.mxu2 %v254_v45 }
  0x1a   :  { %224 = vmatpush.msra.mxu1 %v159_v43  ;;  %210 = vmatpush.msra.mxu0 %v137_v44 }
  0x1b   :  { %190 = vmatpush.msra.mxu3 %v169_v47 }
  0x1c   :  { %225 = vmatpush.msra.mxu1 %v158_v48 }
  0x1d   :  { %22 = vsyncpa [#allocation5], 0  ;;  %211 = vmatpush.msra.mxu0 %v136_v46  ;;  %v167_v54 = vld [vmem:[%s1036_s6 + $0x18] sm:$0xff]  ;;  %284 = vmatpush.msrb.mxu2 %v253_v51  ;;  %v134_v55 = vld [vmem:[%s1035_s5 + $0x10] sm:$0xff]  ;;  %vm386_vm1 = vcmask 1041408   ;;  %s573_s23 = smov 127  }
  0x1e   :  { %191 = vmatpush.msra.mxu3 %v168_v50  ;;  %v251_v56 = vld [vmem:[%s1038_s8 + $0x30] sm:$0xff]  ;;  %226 = vmatpush.msra.mxu1 %v157_v52  ;;  %v133_v58 = vld [vmem:[%s1035_s5 + $0x8] sm:$0xff]  ;;  %v132_v61 = vld [vmem:[%s1035_s5] sm:$0xff]  ;;  %vm391_vm5 = vcmask 9216   ;;  %s440_s26 = sshll.u32 %s1042_s12, 4  ;;  %s577_s3 = smov [#allocation6]   ;;  %s441_s26 = int_to_ptr.hbm [resolvable:$true] %s440_s26 }
  0x1f   :  { %212 = vmatpush.msra.mxu0 %v135_v49  ;;  %v166_v57 = vld [vmem:[%s1036_s6 + $0x10] sm:$0xff]  ;;  %285 = vmatpush.msrb.mxu2 %v252_v53  ;;  %v250_v59 = vld [vmem:[%s1038_s8 + $0x28] sm:$0xff]  ;;  %v332_v62 = vld [vmem:[%s1039_s9 + $0x78] sm:$0xff]  ;;  %s453_s27 = sshll.u32 %s577_s3, 4  ;;  %s455_s0 = sshll.u32 %s1045_s15, 4  ;;  %vm420_vm7 = vcmask 17408   ;;  %s454_s27 = int_to_ptr.vmem [resolvable:$true] %s453_s27  ;;  %s456_s0 = int_to_ptr.hbm [resolvable:$true] %s455_s0 }
  0x20   :  { %192 = vmatpush.msra.mxu3 %v167_v54  ;;  %v165_v60 = vld [vmem:[%s1036_s6 + $0x8] sm:$0xff]  ;;  %v164_v63 = vld [vmem:[%s1036_s6] sm:$0xff]  ;;  %v276_v0 = vld [vmem:[%s1038_s8 + $0xf8] sm:$0xff]  ;;  %s578_s6 = smov [#allocation2]   ;;  %s429_s17 = sshll.u32 %s1041_s11, 4  ;;  %s430_s17 = int_to_ptr.hbm [resolvable:$true] %s429_s17 }
  0x21   :  { %213 = vmatpush.msra.mxu0 %v134_v55  ;;  %286 = vmatpush.msrb.mxu2 %v251_v56  ;;  %v331_v1 = vld [vmem:[%s1039_s9 + $0x70] sm:$0xff]  ;;  %v330_v3 = vld [vmem:[%s1039_s9 + $0x68] sm:$0xff]  ;;  %v329_v5 = vld [vmem:[%s1039_s9 + $0x60] sm:$0xff]  ;;  %s427_s30 = sshll.u32 %s578_s6, 4  ;;  %s428_s30 = int_to_ptr.vmem [resolvable:$true] %s427_s30 }
  0x22   :  { %193 = vmatpush.msra.mxu3 %v166_v57  ;;  %v275_v2 = vld [vmem:[%s1038_s8 + $0xf0] sm:$0xff]  ;;  %v274_v4 = vld [vmem:[%s1038_s8 + $0xe8] sm:$0xff]  ;;  %v273_v6 = vld [vmem:[%s1038_s8 + $0xe0] sm:$0xff] }
  0x23   :  { %214 = vmatpush.msra.mxu0 %v133_v58  ;;  %287 = vmatpush.msrb.mxu2 %v250_v59  ;;  %v328_v7 = vld [vmem:[%s1039_s9 + $0x58] sm:$0xff]  ;;  %v327_v9 = vld [vmem:[%s1039_s9 + $0x50] sm:$0xff]  ;;  %v326_v11 = vld [vmem:[%s1039_s9 + $0x48] sm:$0xff] }
  0x24   :  { %194 = vmatpush.msra.mxu3 %v165_v60  ;;  %v272_v8 = vld [vmem:[%s1038_s8 + $0xd8] sm:$0xff]  ;;  %v271_v10 = vld [vmem:[%s1038_s8 + $0xd0] sm:$0xff]  ;;  %v270_v12 = vld [vmem:[%s1038_s8 + $0xc8] sm:$0xff] }
  0x25   :  { %215 = vmatpush.msra.mxu0 %v132_v61  ;;  %v325_v13 = vld [vmem:[%s1039_s9 + $0x40] sm:$0xff]  ;;  %v324_v14 = vld [vmem:[%s1039_s9 + $0x38] sm:$0xff]  ;;  %v323_v15 = vld [vmem:[%s1039_s9 + $0x30] sm:$0xff] }
  0x26   :  { %195 = vmatpush.msra.mxu3 %v164_v63  ;;  %v156_v16 = vld [vmem:[%s1035_s5 + $0xc0] sm:$0xff]  ;;  %v322_v19 = vld [vmem:[%s1039_s9 + $0x28] sm:$0xff]  ;;  %v155_v20 = vld [vmem:[%s1035_s5 + $0xb8] sm:$0xff] }
  0x27   :  { %333 = vmatpush.msrb.mxu0 %v332_v62  ;;  %v249_v17 = vld [vmem:[%s1038_s8 + $0x20] sm:$0xff]  ;;  %227 = vmatpush.msra.mxu1 %v156_v16  ;;  %v248_v21 = vld [vmem:[%s1038_s8 + $0x18] sm:$0xff]  ;;  %v154_v24 = vld [vmem:[%s1035_s5 + $0xb0] sm:$0xff] }
  0x28   :  { %297 = vmatpush.msrb.mxu3 %v276_v0  ;;  %v269_v18 = vld [vmem:[%s1038_s8 + $0xc0] sm:$0xff]  ;;  %288 = vmatpush.msrb.mxu2 %v249_v17  ;;  %v268_v22 = vld [vmem:[%s1038_s8 + $0xb8] sm:$0xff]  ;;  %v247_v25 = vld [vmem:[%s1038_s8 + $0x10] sm:$0xff]  ;;  %v574_v0 = vmov 0  }
  0x29   :  { %334 = vmatpush.msrb.mxu0 %v331_v1  ;;  %228 = vmatpush.msra.mxu1 %v155_v20  ;;  %v321_v23 = vld [vmem:[%s1039_s9 + $0x20] sm:$0xff]  ;;  %v267_v26 = vld [vmem:[%s1038_s8 + $0xb0] sm:$0xff]  ;;  %v320_v27 = vld [vmem:[%s1039_s9 + $0x18] sm:$0xff] }
  0x2a   :  { %298 = vmatpush.msrb.mxu3 %v275_v2  ;;  %289 = vmatpush.msrb.mxu2 %v248_v21  ;;  %v153_v28 = vld [vmem:[%s1035_s5 + $0xa8] sm:$0xff]  ;;  %v319_v31 = vld [vmem:[%s1039_s9 + $0x10] sm:$0xff]  ;;  %v152_v32 = vld [vmem:[%s1035_s5 + $0xa0] sm:$0xff] }
  0x2b   :  { %335 = vmatpush.msrb.mxu0 %v330_v3  ;;  %229 = vmatpush.msra.mxu1 %v154_v24  ;;  %v246_v29 = vld [vmem:[%s1038_s8 + $0x8] sm:$0xff]  ;;  %v245_v33 = vld [vmem:[%s1038_s8] sm:$0xff]  ;;  %v151_v36 = vld [vmem:[%s1035_s5 + $0x98] sm:$0xff] }
  0x2c   :  { %299 = vmatpush.msrb.mxu3 %v274_v4  ;;  %290 = vmatpush.msrb.mxu2 %v247_v25  ;;  %v266_v30 = vld [vmem:[%s1038_s8 + $0xa8] sm:$0xff]  ;;  %v265_v34 = vld [vmem:[%s1038_s8 + $0xa0] sm:$0xff]  ;;  %v264_v37 = vld [vmem:[%s1038_s8 + $0x98] sm:$0xff] }
  0x2d   :  { %336 = vmatpush.msrb.mxu0 %v329_v5  ;;  %230 = vmatpush.msra.mxu1 %v153_v28  ;;  %v318_v35 = vld [vmem:[%s1039_s9 + $0x8] sm:$0xff]  ;;  %v317_v38 = vld [vmem:[%s1039_s9] sm:$0xff]  ;;  %v150_v39 = vld [vmem:[%s1035_s5 + $0x90] sm:$0xff]  ;;  %v575_v5 = vmov 1  }
  0x2e   :  { %300 = vmatpush.msrb.mxu3 %v273_v6  ;;  %291 = vmatpush.msrb.mxu2 %v246_v29  ;;  %v263_v40 = vld [vmem:[%s1038_s8 + $0x90] sm:$0xff]  ;;  %v149_v41 = vld [vmem:[%s1035_s5 + $0x88] sm:$0xff]  ;;  %v148_v43 = vld [vmem:[%s1035_s5 + $0x80] sm:$0xff] }
  0x2f   :  { %337 = vmatpush.msrb.mxu0 %v328_v7  ;;  %231 = vmatpush.msra.mxu1 %v152_v32  ;;  %v262_v42 = vld [vmem:[%s1038_s8 + $0x88] sm:$0xff]  ;;  %v261_v44 = vld [vmem:[%s1038_s8 + $0x80] sm:$0xff] }
  0x30   :  { %301 = vmatpush.msrb.mxu3 %v272_v8  ;;  %292 = vmatpush.msrb.mxu2 %v245_v33  ;;  %v54_v45 = vld [vmem:[%s1032_s2] sm:$0x3] }
  0x31   :  { %338 = vmatpush.msrb.mxu0 %v327_v9  ;;  %232 = vmatpush.msra.mxu1 %v151_v36  ;;  %v56_v46 = vperm.slane %v54_v45, 0  ;;  %v490_v49 = vld [vmem:[%s1034_s4] ss:$0 sm:$0xff]  ;;  %v57_v50 = vperm.slane %v54_v45, 1 }
  0x32   :  { %302 = vmatpush.msrb.mxu3 %v271_v10  ;;  %v491_v61 = vld [vmem:[%s1037_s7] ss:$0 sm:$0xff]  ;;  %486 = vset.pattern.permute.xlu0 %v574_v0  ;;  %s576_s7 = smov [#allocation4]  }
  0x33   :  { %339 = vmatpush.msrb.mxu0 %v326_v11  ;;  %233 = vmatpush.msra.mxu1 %v150_v39  ;;  %v492_v33 = vld [vmem:[%s1040_s10] ss:$0 sm:$0xff] }
  0x34   :  { %303 = vmatpush.msrb.mxu3 %v270_v12  ;;  %487 = vset.pattern.permute.xlu1 %v574_v0 }
  0x35   :  { %340 = vmatpush.msrb.mxu0 %v325_v13  ;;  %234 = vmatpush.msra.mxu1 %v149_v41 }
  0x36   :  { %304 = vmatpush.msrb.mxu3 %v269_v18 }
  0x37   :  { %341 = vmatpush.msrb.mxu0 %v324_v14  ;;  %235 = vmatpush.msra.mxu1 %v148_v43 }
  0x38   :  { %305 = vmatpush.msrb.mxu3 %v268_v22 }
  0x39   :  { %342 = vmatpush.msrb.mxu0 %v323_v15 }
  0x3a   :  { %306 = vmatpush.msrb.mxu3 %v267_v26 }
  0x3b   :  { %343 = vmatpush.msrb.mxu0 %v322_v19 }
  0x3c   :  { %307 = vmatpush.msrb.mxu3 %v266_v30 }
  0x3d   :  { %344 = vmatpush.msrb.mxu0 %v321_v23 }
  0x3e   :  { %308 = vmatpush.msrb.mxu3 %v265_v34 }
  0x3f   :  { %345 = vmatpush.msrb.mxu0 %v320_v27 }
  0x40   :  { %309 = vmatpush.msrb.mxu3 %v264_v37 }
  0x41   :  { %346 = vmatpush.msrb.mxu0 %v319_v31 }
  0x42   :  { %310 = vmatpush.msrb.mxu3 %v263_v40 }
  0x43   :  { %347 = vmatpush.msrb.mxu0 %v318_v35 }
  0x44   :  { %311 = vmatpush.msrb.mxu3 %v262_v42 }
  0x45   :  { %348 = vmatpush.msrb.mxu0 %v317_v38 }
  0x46   :  { %312 = vmatpush.msrb.mxu3 %v261_v44 }
  0x86   :  { %v81_v47 = vpop.f32.mrf.mxu1 }
  0x87   :  { %v992_v48 = vadd.f32 %v81_v47, %v56_v46 }
  0x89   :  { %216 = vmatmul.f32.vlgmr.msra.gmra.mxu0 %v992_v48  ;;  %293 = vmatmul.f32.vlgmr.msrb.gmra.mxu2 %v992_v48 }
  0x8c   :  { %v129_v51 = vpop.f32.mrf.mxu2 }
  0x8d   :  { %v999_v52 = vadd.f32 %v490_v49, %v129_v51 }
  0x8e   :  { %v101_v53 = vpop.f32.mrf.mxu1 }
  0x8f   :  { %390 = vst [vmem:[%s1044_s14] sm:$0x3] %v999_v52  ;;  %v102_v54 = vadd.f32 %v101_v53, %v57_v50  ;;  %196 = vmatmul.f32.vlgmr.msra.gmra.mxu3 %v999_v52 }
  0x91   :  { %v385_v55 = vrot.slane %v102_v54, 6  ;;  %349 = vmatmul.f32.vlgmr.msrb.gmra.mxu0 %v999_v52  ;;  %236 = vmatmul.f32.vlgmr.msra.gmra.mxu1 %v102_v54 }
  0x93   :  { %v387_v56 = vsel %vm386_vm1, %v992_v48, %v385_v55 }
  0x94   :  { %389 = vst [vmem:[%s1043_s13] sm:$0xf] %v387_v56  ;;  %s438_s13 = sshll.u32 %s576_s7, 4  ;;  %s439_s13 = int_to_ptr.vmem [resolvable:$true] %s438_s13 }
  0x97   :  { %313 = vmatmul.f32.vlgmr.msrb.gmra.mxu3 %v102_v54 }
 0x106   :  { %v217_v57 = vpop.f32.mrf.mxu0 }
 0x10c   :  { %v294_v26 = vpop.f32.mrf.mxu2 }
 0x10e   :  { %v237_v59 = vpop.f32.mrf.mxu1  ;;  %v350_v28 = vpop.f32.mrf.mxu0 }
 0x112   :  { %v197_v58 = vpop.f32.mrf.mxu3 }
 0x113   :  { %v218_v60 = vadd.f32 %v217_v57, %v197_v58 }
 0x115   :  { %v238_v62 = vadd.f32 %v237_v59, %v218_v60 }
 0x117   :  { %v244_v63 = vadd.f32 %v491_v61, %v238_v62 }
 0x119   :  { %354 = vrot.lane.b32.xlu0 %v244_v63, %s573_s23  ;;  %v358_v3 = vmul.f32 2.0, %v244_v63 }
 0x11a   :  { %v314_v24 = vpop.f32.mrf.mxu3 }
 0x11b   :  { %v315_v27 = vadd.f32 %v314_v24, %v294_v26 }
 0x18b   :  { %v355_v1 = vpop.permute.xlu0 %354 }
 0x18c   :  { %v357_v2 = vadd.f32 %v355_v1, %v244_v63 }
 0x18e   :  { %361 = vperm.xlu0 %486, %v357_v2  }
 0x196   :  { %489 = vset.pattern.permute.xlu0 %v575_v5 }
 0x200   :  { %v362_v4 = vpop.permute.xlu0 %361 }
 0x201   :  { %v364_v6 = vsub.f32 %v362_v4, %v358_v3 }
 0x203   :  { %v365_v7 = vmul.f32 1.442695, %v364_v6 }
 0x205   :  { %493 = vpow2.f32 %v365_v7 }
 0x20b   :  { %v494_v8 = vpop.eup %493 }
 0x20c   :  { %v367_v9 = vadd.f32 1.0, %v494_v8 }
 0x20e   :  { %495 = vrcp.f32 %v367_v9  ;;  %v379_v13 = vand.u32 2147483648, %v367_v9  ;;  %v377_v15 = vand.u32 2147483647, %v367_v9  ;;  %vm373_vm3 = vweird.f32 %v367_v9 }
 0x210   :  { %v380_v17 = vor.u32 1.1754944e-38, %v379_v13  ;;  %vm378_vm6 = vcmp.eq.f32.partialorder %v377_v15, 8.507059e+37 }
 0x214   :  { %v496_v10 = vpop.eup %495 }
 0x215   :  { %v369_v11 = vmul.f32 %v496_v10, %v367_v9  ;;  %vm374_vm2 = vweird.f32 %v496_v10 }
 0x216   :  { %vm375_vm4 = vmor %vm373_vm3, %vm374_vm2 }
 0x217   :  { %v370_v12 = vsub.f32 1.0, %v369_v11 }
 0x219   :  { %v371_v14 = vmul.f32 %v496_v10, %v370_v12 }
 0x21b   :  { %v372_v16 = vadd.f32 %v496_v10, %v371_v14 }
 0x21d   :  { %v376_v18 = vsel %vm375_vm4, %v496_v10, %v372_v16 }
 0x21e   :  { %v381_v19 = vsel %vm378_vm6, %v380_v17, %v376_v18 }
 0x21f   :  { %395 = vperm.xlu1 %487, %v381_v19   ;;  %392 = vst.msk [vmem:[#allocation6] sm:$0x3] %vm391_vm5, %v381_v19 }
 0x227   :  { %488 = vset.pattern.permute.xlu1 %v575_v5 }
 0x228   :  { %407 = vperm.xlu1 %488, %v381_v19  }
 0x291   :  { %v396_v20 = vpop.permute.xlu1 %395 }
 0x292   :  { %v399_v21 = vmul.f32 %v396_v20, %v102_v54  ;;  %v398_v22 = vmul.f32 %v396_v20, %v992_v48  ;;  %v412_v30 = vmul.f32 %v396_v20, %v315_v27 }
 0x294   :  { %v402_v23 = vrot.slane %v399_v21, 6 }
 0x296   :  { %v403_v25 = vsel %vm386_vm1, %v398_v22, %v402_v23 }
 0x297   :  { %405 = vst [vmem:[#allocation4] sm:$0xf] %v403_v25 }
 0x29a   :  { %v408_v29 = vpop.permute.xlu1 %407 }
 0x29b   :  { %v410_v31 = vmul.f32 %v408_v29, %v999_v52  ;;  %v413_v32 = vmul.f32 %v408_v29, %v350_v28 }
 0x29d   :  { %411 = vst [vmem:[#allocation4 + $0x4] sm:$0x3] %v410_v31  ;;  %v414_v34 = vadd.f32 %v413_v32, %v412_v30 }
 0x29e   :  { %443 = dma.vmem_to_hbm [thread:$0]  %s439_s13, 96, %s441_s26, [#allocation5]  }
 0x29f   :  { %v419_v35 = vadd.f32 %v492_v33, %v414_v34  ;;  %458 = dma.vmem_to_hbm [thread:$0]  %s454_s27, 32, %s456_s0, [#allocation5]  }
 0x2a1   :  { %421 = vst.msk [vmem:[#allocation2] sm:$0x3] %vm420_vm7, %v419_v35 }
 0x2a2   :  { %432 = dma.vmem_to_hbm [thread:$0]  %s428_s30, 32, %s430_s17, [#allocation3]  }
 0x2a3   :  { %569 = dma.done.wait [#allocation3], 32  }
 0x2a4   :  { %570 = vsyncadd [#allocation3], 4294967264 }
 0x2a5   :  { %571 = dma.done.wait [#allocation5], 128  }
 0x2a6   :  { %572 = vsyncadd [#allocation5], 4294967168 }
 0x2a7   :  { %475 = vsyncpa [#allocation3], 1 }
 0x2a8   :  { %476 = vsyncpa [#allocation5], 1 }

</bundles_post_ra>
